<compile_context>
chip_gen: v7x
topology: tpu7x:2x2x1
jax: 0.10.0
libtpu: 0.0.40
codegen_flags: <defaults>
</compile_context>

<pallas_src>
import functools

import jax
import jax.numpy as jnp
from jax.experimental import pallas as pl
from jax.experimental.pallas import tpu as pltpu


# ---------------------------------------------------------------------------
# Fused ChannelAttention kernel
# ---------------------------------------------------------------------------
def _channel_attention_kernel(x_ref, w1_ref, w2_ref, o_ref, sum_acc, max_acc,
                              *, inv_hw):
    # x_ref   : (NB, C, THW)  NB images, channels on sublanes, spatial on lanes
    # w1_ref  : (C, C)        first 1x1-conv weight, laid out (Cin, Cout)
    # w2_ref  : (C, C)        second 1x1-conv weight, laid out (Cin, Cout)
    # o_ref   : (NB, 1, C)    sigmoid(fc(avg) + fc(max)) for these images
    # sum_acc : (NB, C) f32   running spatial sum   (VMEM scratch)
    # max_acc : (NB, C) f32   running spatial max   (VMEM scratch)
    h = pl.program_id(1)

    @pl.when(h == 0)
    def _init():
        sum_acc[...] = jnp.zeros_like(sum_acc)
        max_acc[...] = jnp.full_like(max_acc, -jnp.inf)

    # Partial pooling over this spatial tile (f32 accumulation).
    x = x_ref[...].astype(jnp.float32)                        # (NB, C, THW)
    sum_acc[...] += jnp.sum(x, axis=-1)                       # (NB, C)
    max_acc[...] = jnp.maximum(max_acc[...], jnp.max(x, axis=-1))

    @pl.when(h == pl.num_programs(1) - 1)
    def _finalize():
        avg = sum_acc[...] * inv_hw                           # (NB, C)
        mx = max_acc[...]                                     # (NB, C)
        nb = mx.shape[0]

        # One MXU pass serves both branches: rows [0, NB) = avg-pooled,
        # rows [NB, 2*NB) = max-pooled.  (MXU pads sublanes for free.)
        p = jnp.concatenate([avg, mx], axis=0)                # (2*NB, C)
        hid = jnp.maximum(
            jnp.dot(p, w1_ref[...], preferred_element_type=jnp.float32), 0.0)
        y2 = jnp.dot(hid, w2_ref[...], preferred_element_type=jnp.float32)
        y = y2[:nb] + y2[nb:]                                 # fc(avg)+fc(max)

        o_ref[...] = jax.nn.sigmoid(y)[:, None, :].astype(o_ref.dtype)


# ---------------------------------------------------------------------------
# Block-size selection helpers (static, host-side)
# ---------------------------------------------------------------------------
def _choose_nb(n):
    # Images per grid step.  NB sits on the 3rd-from-last block dim, so it has
    # no (8,128) alignment constraint; bigger NB = bigger per-step DMAs.
    if n <= 8:
        return n
    for nb in (8, 4, 2):
        if n % nb == 0:
            return nb
    return 1


def _choose_thw(hw, c, nb, max_block_bytes):
    # Spatial tile per grid step.  Use the full extent when the block fits the
    # budget; otherwise the largest multiple-of-128 divisor of HW that fits
    # (lane dim must be a multiple of 128 or equal the full extent), so THW
    # always divides HW exactly -> no tail masking needed.
    if nb * c * hw * 4 <= max_block_bytes:
        return hw
    best = None
    d = 128
    while d <= hw:
        if hw % d == 0 and nb * c * d * 4 <= max_block_bytes:
            best = d
        d += 128
    return best if best is not None else hw


# ---------------------------------------------------------------------------
# Wrapper
# ---------------------------------------------------------------------------
def channel_attention(x_nchw, w1, w2, *, max_block_bytes=8 << 20):
    """ChannelAttention forward.

    x_nchw : (N, C, H, W)
    w1, w2 : (C, C) = PyTorch Conv2d(C, C, 1, bias=False).weight[:, :, 0, 0]
    returns: (N, C, 1, 1) sigmoid attention weights (matches the nn.Module).
    """
    N, C, H, W = x_nchw.shape
    HW = H * W

    # Free metadata reshape (no transpose / extra HBM pass): channels stay on
    # the sublane axis, spatial positions go on the lane axis.
    x = x_nchw.reshape(N, C, HW)
    # Conv weights (Cout, Cin) -> (Cin, Cout) so the kernel does plain matmuls
    # (tiny C x C arrays; negligible cost).
    w1_t = jnp.transpose(w1)
    w2_t = jnp.transpose(w2)

    NB = _choose_nb(N)
    THW = _choose_thw(HW, C, NB, max_block_bytes)
    n_blocks = N // NB
    hw_blocks = HW // THW

    kernel = functools.partial(_channel_attention_kernel, inv_hw=1.0 / float(HW))

    itemsize = 4
    cost = pl.CostEstimate(
        flops=N * (2 * HW * C + 8 * C * C),
        transcendentals=N * C,
        bytes_accessed=(N * HW * C + 2 * C * C + N * C) * itemsize,
    )

    # Explicit VMEM budget: double-buffered x blocks + double-buffered weights
    # + scratch, with headroom.  v5e's scoped default is only 16 MiB; keep the
    # limit well under v7x's 64 MiB physical VMEM.
    need = 2 * NB * C * THW * 4 + 4 * C * C * 4 + 2 * NB * C * 4 + (8 << 20)
    vmem_limit = int(min(max(need, 16 << 20), 48 << 20))

    out = pl.pallas_call(
        kernel,
        out_shape=jax.ShapeDtypeStruct((N, 1, C), x_nchw.dtype),
        grid=(n_blocks, hw_blocks),
        in_specs=[
            pl.BlockSpec((NB, C, THW), lambda n, h: (n, 0, h)),
            pl.BlockSpec((C, C), lambda n, h: (0, 0)),
            pl.BlockSpec((C, C), lambda n, h: (0, 0)),
        ],
        out_specs=pl.BlockSpec((NB, 1, C), lambda n, h: (n, 0, 0)),
        scratch_shapes=[
            pltpu.VMEM((NB, C), jnp.float32),   # running sum
            pltpu.VMEM((NB, C), jnp.float32),   # running max
        ],
        compiler_params=pltpu.CompilerParams(
            dimension_semantics=("parallel", "arbitrary"),
            vmem_limit_bytes=vmem_limit,
        ),
        cost_estimate=cost,
    )(x, w1_t, w2_t)

    return out.reshape(N, C, 1, 1)


# ---------------------------------------------------------------------------
# Pure-JAX reference (for correctness check)
# ---------------------------------------------------------------------------
def channel_attention_ref(x, w1, w2):
    avg = jnp.mean(x, axis=(2, 3))                            # (N, C)
    mx = jnp.max(x, axis=(2, 3))                              # (N, C)

    def fc(p):
        return jnp.maximum(p @ w1.T, 0.0) @ w2.T

    y = fc(avg) + fc(mx)
    return jax.nn.sigmoid(y)[:, :, None, None]                # (N, C, 1, 1)


# ---------------------------------------------------------------------------
if __name__ == "__main__":
    key = jax.random.PRNGKey(0)
    kx, k1, k2 = jax.random.split(key, 3)

    # Small deterministic example: batch=2, in_planes=128 (lane-dense), 16x16.
    N, C, H, W = 2, 128, 16, 16
    x = jax.random.normal(kx, (N, C, H, W), dtype=jnp.float32)

    # PyTorch Conv2d default-style init for the two bias-free 1x1 convs.
    bound = 1.0 / (C ** 0.5)
    w1 = jax.random.uniform(k1, (C, C), jnp.float32, -bound, bound)
    w2 = jax.random.uniform(k2, (C, C), jnp.float32, -bound, bound)

    out = jax.jit(channel_attention)(x, w1, w2)
    out = jax.block_until_ready(out)

    assert out.shape == (N, C, 1, 1), out.shape
    assert bool(jnp.all(jnp.isfinite(out)))

    ref = jax.block_until_ready(channel_attention_ref(x, w1, w2))
    max_err = float(jnp.max(jnp.abs(out - ref)))
    assert jnp.allclose(out, ref, rtol=5e-3, atol=5e-3), max_err

    print("KERNEL_OK")
</pallas_src>

<mosaic_0001>
module attributes {stable_mosaic.version = 11 : i64} {
  func.func @_channel_attention_kernel(%arg0: i32, %arg1: i32, %arg2: memref<2x128x256xf32, #tpu.memory_space<vmem>>, %arg3: memref<128x128xf32, #tpu.memory_space<vmem>>, %arg4: memref<128x128xf32, #tpu.memory_space<vmem>>, %arg5: memref<2x1x128xf32, #tpu.memory_space<vmem>>, %arg6: memref<2x128xf32, #tpu.memory_space<vmem>>, %arg7: memref<2x128xf32, #tpu.memory_space<vmem>>) attributes {dimension_semantics = [#tpu.dimension_semantics<parallel>, #tpu.dimension_semantics<arbitrary>], iteration_bounds = array<i64: 1, 1>, scalar_prefetch = 0 : i64, scratch_operands = 2 : i64, tpu.core_type = #tpu.core_type<tc>, window_params = [{transform_indices = @transform_0, window_bounds = array<i64: 2, 128, 256>}, {pipeline_mode = #tpu.pipeline_mode<synchronous>, transform_indices = @transform_1, window_bounds = array<i64: 128, 128>}, {pipeline_mode = #tpu.pipeline_mode<synchronous>, transform_indices = @transform_2, window_bounds = array<i64: 128, 128>}, {transform_indices = @transform_3, window_bounds = array<i64: 2, 1, 128>}]} {
    %c0_i32 = arith.constant 0 : i32
    %0 = arith.cmpi eq, %arg1, %c0_i32 : i32
    %1 = arith.extui %0 : i1 to i32
    %c0_i32_0 = arith.constant 0 : i32
    %2 = arith.cmpi ne, %1, %c0_i32_0 : i32
    scf.if %2 {
      %cst_14 = arith.constant 0.000000e+00 : f32
      %15 = vector.broadcast %cst_14 : f32 to vector<2x128xf32>
      %c0_15 = arith.constant 0 : index
      %c0_16 = arith.constant 0 : index
      %16 = vector.load %arg6[%c0_15, %c0_16] : memref<2x128xf32, #tpu.memory_space<vmem>>, vector<2x128xf32>
      tpu.vector_store %arg6[%c0_15, %c0_16], %15 {strides = array<i32>} : memref<2x128xf32, #tpu.memory_space<vmem>>, vector<2x128xf32>,
      %cst_17 = arith.constant 0xFF800000 : f32
      %17 = vector.broadcast %cst_17 : f32 to vector<2x128xf32>
      %c0_18 = arith.constant 0 : index
      %c0_19 = arith.constant 0 : index
      %18 = vector.load %arg7[%c0_18, %c0_19] : memref<2x128xf32, #tpu.memory_space<vmem>>, vector<2x128xf32>
      tpu.vector_store %arg7[%c0_18, %c0_19], %17 {strides = array<i32>} : memref<2x128xf32, #tpu.memory_space<vmem>>, vector<2x128xf32>,
    } else {
    }
    %c0 = arith.constant 0 : index
    %c0_1 = arith.constant 0 : index
    %c0_2 = arith.constant 0 : index
    %3 = vector.load %arg2[%c0, %c0_1, %c0_2] : memref<2x128x256xf32, #tpu.memory_space<vmem>>, vector<2x128x256xf32>
    %c0_3 = arith.constant 0 : index
    %c0_4 = arith.constant 0 : index
    %4 = vector.load %arg6[%c0_3, %c0_4] : memref<2x128xf32, #tpu.memory_space<vmem>>, vector<2x128xf32>
    %cst = arith.constant dense<0.000000e+00> : vector<2x128xf32>
    %5 = vector.multi_reduction <add>, %3, %cst [2] : vector<2x128x256xf32> to vector<2x128xf32>
    %6 = arith.addf %4, %5 : vector<2x128xf32>
    %c0_5 = arith.constant 0 : index
    %c0_6 = arith.constant 0 : index
    %7 = vector.load %arg6[%c0_5, %c0_6] : memref<2x128xf32, #tpu.memory_space<vmem>>, vector<2x128xf32>
    tpu.vector_store %arg6[%c0_5, %c0_6], %6 {strides = array<i32>} : memref<2x128xf32, #tpu.memory_space<vmem>>, vector<2x128xf32>,
    %c0_7 = arith.constant 0 : index
    %c0_8 = arith.constant 0 : index
    %8 = vector.load %arg7[%c0_7, %c0_8] : memref<2x128xf32, #tpu.memory_space<vmem>>, vector<2x128xf32>
    %cst_9 = arith.constant dense<0xFF800000> : vector<2x128xf32>
    %9 = vector.multi_reduction <maximumf>, %3, %cst_9 [2] : vector<2x128x256xf32> to vector<2x128xf32>
    %10 = arith.maximumf %8, %9 : vector<2x128xf32>
    %c0_10 = arith.constant 0 : index
    %c0_11 = arith.constant 0 : index
    %11 = vector.load %arg7[%c0_10, %c0_11] : memref<2x128xf32, #tpu.memory_space<vmem>>, vector<2x128xf32>
    tpu.vector_store %arg7[%c0_10, %c0_11], %10 {strides = array<i32>} : memref<2x128xf32, #tpu.memory_space<vmem>>, vector<2x128xf32>,
    %c0_i32_12 = arith.constant 0 : i32
    %12 = arith.cmpi eq, %arg1, %c0_i32_12 : i32
    %13 = arith.extui %12 : i1 to i32
    %c0_i32_13 = arith.constant 0 : i32
    %14 = arith.cmpi ne, %13, %c0_i32_13 : i32
    scf.if %14 {
      %c0_14 = arith.constant 0 : index
      %c0_15 = arith.constant 0 : index
      %15 = vector.load %arg6[%c0_14, %c0_15] : memref<2x128xf32, #tpu.memory_space<vmem>>, vector<2x128xf32>
      %cst_16 = arith.constant 3.906250e-03 : f32
      %16 = vector.broadcast %cst_16 : f32 to vector<2x128xf32>
      %17 = arith.mulf %15, %16 : vector<2x128xf32>
      %c0_17 = arith.constant 0 : index
      %c0_18 = arith.constant 0 : index
      %18 = vector.load %arg7[%c0_17, %c0_18] : memref<2x128xf32, #tpu.memory_space<vmem>>, vector<2x128xf32>
      %19 = tpu.concatenate %17, %18 in 0 : vector<2x128xf32>, vector<2x128xf32> -> vector<4x128xf32>
      %c0_19 = arith.constant 0 : index
      %c0_20 = arith.constant 0 : index
      %20 = vector.load %arg3[%c0_19, %c0_20] : memref<128x128xf32, #tpu.memory_space<vmem>>, vector<128x128xf32>
      %cst_21 = arith.constant dense<0.000000e+00> : vector<4x128xf32>
      %21 = tpu.matmul %19, %20, %cst_21 {dimension_numbers = #tpu.dot_dimension_numbers<[1], [0], [0], [1], [0, 0, 1, 1], [], []>} : vector<4x128xf32>, vector<128x128xf32>, vector<4x128xf32> -> vector<4x128xf32>
      %cst_22 = arith.constant 0.000000e+00 : f32
      %22 = vector.broadcast %cst_22 : f32 to vector<4x128xf32>
      %23 = arith.maximumf %21, %22 : vector<4x128xf32>
      %c0_23 = arith.constant 0 : index
      %c0_24 = arith.constant 0 : index
      %24 = vector.load %arg4[%c0_23, %c0_24] : memref<128x128xf32, #tpu.memory_space<vmem>>, vector<128x128xf32>
      %cst_25 = arith.constant dense<0.000000e+00> : vector<4x128xf32>
      %25 = tpu.matmul %23, %24, %cst_25 {dimension_numbers = #tpu.dot_dimension_numbers<[1], [0], [0], [1], [0, 0, 1, 1], [], []>} : vector<4x128xf32>, vector<128x128xf32>, vector<4x128xf32> -> vector<4x128xf32>
      %26 = vector.extract_strided_slice %25 {offsets = [0, 0], sizes = [2, 128], strides = [1, 1]} : vector<4x128xf32> to vector<2x128xf32>
      %27 = vector.extract_strided_slice %25 {offsets = [2, 0], sizes = [2, 128], strides = [1, 1]} : vector<4x128xf32> to vector<2x128xf32>
      %28 = arith.addf %26, %27 : vector<2x128xf32>
      %29 = arith.negf %28 : vector<2x128xf32>
      %30 = math.exp %29 : vector<2x128xf32>
      %cst_26 = arith.constant 1.000000e+00 : f32
      %31 = vector.broadcast %cst_26 : f32 to vector<2x128xf32>
      %32 = arith.addf %31, %30 : vector<2x128xf32>
      %33 = arith.divf %31, %32 : vector<2x128xf32>
      %34 = vector.shape_cast %33 : vector<2x128xf32> to vector<2x1x128xf32>
      %c0_27 = arith.constant 0 : index
      %c0_28 = arith.constant 0 : index
      %c0_29 = arith.constant 0 : index
      %35 = vector.load %arg5[%c0_27, %c0_28, %c0_29] : memref<2x1x128xf32, #tpu.memory_space<vmem>>, vector<2x1x128xf32>
      tpu.vector_store %arg5[%c0_27, %c0_28, %c0_29], %34 {strides = array<i32>} : memref<2x1x128xf32, #tpu.memory_space<vmem>>, vector<2x1x128xf32>,
    } else {
    }
    return
  }
  func.func @transform_0(%arg0: i32, %arg1: i32) -> (i32, i32, i32) {
    %c0_i32 = arith.constant 0 : i32
    %c0_i32_0 = arith.constant 0 : i32
    return %arg0, %c0_i32, %arg1 : i32, i32, i32
  }
  func.func @transform_1(%arg0: i32, %arg1: i32) -> (i32, i32) {
    %c0_i32 = arith.constant 0 : i32
    %c0_i32_0 = arith.constant 0 : i32
    %c0_i32_1 = arith.constant 0 : i32
    return %c0_i32, %c0_i32_0 : i32, i32
  }
  func.func @transform_2(%arg0: i32, %arg1: i32) -> (i32, i32) {
    %c0_i32 = arith.constant 0 : i32
    %c0_i32_0 = arith.constant 0 : i32
    %c0_i32_1 = arith.constant 0 : i32
    return %c0_i32, %c0_i32_0 : i32, i32
  }
  func.func @transform_3(%arg0: i32, %arg1: i32) -> (i32, i32, i32) {
    %c0_i32 = arith.constant 0 : i32
    %c0_i32_0 = arith.constant 0 : i32
    %c0_i32_1 = arith.constant 0 : i32
    return %arg0, %c0_i32, %c0_i32_0 : i32, i32, i32
  }
}

</mosaic_0001>

<bundles_post_ra>
// kernel: channel_attention.1
= control target key start
LH: loop header
LB: loop body
LE: loop exit
PB: predicated region body
PF: predicated region fallthrough
CT: control target
= control target key end

     0   :  { %s1711_s0 = inlined_call_operand.vmem [shape: f32[2,128,256], index: 0, kind: input, shape index: {}]   ;;  %s1712_s1 = inlined_call_operand.vmem [shape: f32[128,128], index: 1, kind: input, shape index: {}]   ;;  %s1713_s2 = inlined_call_operand.vmem [shape: f32[128,128], index: 2, kind: input, shape index: {}]   ;;  %s1714_s3 = inlined_call_operand.hbm [shape: f32[2,1,128], index: 3, kind: output, shape index: {}]  }
   0x1   :  { %v53_v0 = vld [vmem:[%s1711_s0 + $0x100] sm:$0xff]  ;;  %v54_v1 = vld [vmem:[%s1711_s0 + $0x108] sm:$0xff]  ;;  %v55_v5 = vld [vmem:[%s1711_s0 + $0x110] sm:$0xff] }
   0x2   :  { %v21_v2 = vld [vmem:[%s1711_s0] sm:$0xff]  ;;  %v134_v3 = vadd.f32 %v54_v1, %v53_v0  ;;  %v22_v4 = vld [vmem:[%s1711_s0 + $0x8] sm:$0xff]  ;;  %v56_v6 = vld [vmem:[%s1711_s0 + $0x118] sm:$0xff]  ;;  %v458_v15 = vmax.f32 %v53_v0, %v54_v1 }
   0x3   :  { %v86_v7 = vadd.f32 %v22_v4, %v21_v2  ;;  %v23_v8 = vld [vmem:[%s1711_s0 + $0x10] sm:$0xff]  ;;  %v24_v9 = vld [vmem:[%s1711_s0 + $0x18] sm:$0xff]  ;;  %v137_v10 = vadd.f32 %v56_v6, %v55_v5  ;;  %v410_v13 = vmax.f32 %v21_v2, %v22_v4  ;;  %v461_v14 = vmax.f32 %v55_v5, %v56_v6  ;;  %v57_v16 = vld [vmem:[%s1711_s0 + $0x120] sm:$0xff] }
   0x4   :  { %135 = vadd.xlane.f32.xlu1 %v134_v3  ;;  %v89_v11 = vadd.f32 %v24_v9, %v23_v8  ;;  %v413_v12 = vmax.f32 %v23_v8, %v24_v9  ;;  %v58_v17 = vld [vmem:[%s1711_s0 + $0x128] sm:$0xff]  ;;  %v25_v18 = vld [vmem:[%s1711_s0 + $0x20] sm:$0xff]  ;;  %v59_v24 = vld [vmem:[%s1711_s0 + $0x130] sm:$0xff] }
   0x5   :  { %87 = vadd.xlane.f32.xlu0 %v86_v7  ;;  %v26_v19 = vld [vmem:[%s1711_s0 + $0x28] sm:$0xff]  ;;  %v140_v20 = vadd.f32 %v58_v17, %v57_v16  ;;  %v464_v22 = vmax.f32 %v57_v16, %v58_v17  ;;  %v60_v25 = vld [vmem:[%s1711_s0 + $0x138] sm:$0xff]  ;;  %v27_v26 = vld [vmem:[%s1711_s0 + $0x30] sm:$0xff] }
   0x6   :  { %v92_v21 = vadd.f32 %v26_v19, %v25_v18  ;;  %v416_v23 = vmax.f32 %v25_v18, %v26_v19  ;;  %v28_v27 = vld [vmem:[%s1711_s0 + $0x38] sm:$0xff] }
   0x8   :  { %138 = vadd.xlane.f32.xlu1 %v137_v10 }
   0x9   :  { %90 = vadd.xlane.f32.xlu0 %v89_v11 }
   0xc   :  { %414 = vmax.xlane.f32.xlu1 %v413_v12 }
   0xd   :  { %411 = vmax.xlane.f32.xlu0 %v410_v13 }
  0x10   :  { %462 = vmax.xlane.f32.xlu1 %v461_v14 }
  0x11   :  { %459 = vmax.xlane.f32.xlu0 %v458_v15 }
  0x14   :  { %141 = vadd.xlane.f32.xlu1 %v140_v20 }
  0x15   :  { %93 = vadd.xlane.f32.xlu0 %v92_v21 }
  0x16   :  { %8 = vsyncpa [#allocation5], 0  ;;  %v143_v28 = vadd.f32 %v60_v25, %v59_v24  ;;  %v95_v29 = vadd.f32 %v28_v27, %v27_v26  ;;  %v467_v30 = vmax.f32 %v59_v24, %v60_v25  ;;  %v419_v31 = vmax.f32 %v27_v26, %v28_v27  ;;  %v61_v32 = vld [vmem:[%s1711_s0 + $0x140] sm:$0xff]  ;;  %v62_v33 = vld [vmem:[%s1711_s0 + $0x148] sm:$0xff] }
  0x17   :  { %v29_v34 = vld [vmem:[%s1711_s0 + $0x40] sm:$0xff]  ;;  %v30_v35 = vld [vmem:[%s1711_s0 + $0x48] sm:$0xff]  ;;  %v146_v36 = vadd.f32 %v62_v33, %v61_v32  ;;  %v470_v38 = vmax.f32 %v61_v32, %v62_v33  ;;  %v63_v40 = vld [vmem:[%s1711_s0 + $0x150] sm:$0xff]  ;;  %vm225_vm0 = vcmask 130112   ;;  %vm1131_vm1 = vmmov 0  }
  0x18   :  { %465 = vmax.xlane.f32.xlu1 %v464_v22  ;;  %v98_v37 = vadd.f32 %v30_v35, %v29_v34  ;;  %v422_v39 = vmax.f32 %v29_v34, %v30_v35  ;;  %v64_v41 = vld [vmem:[%s1711_s0 + $0x158] sm:$0xff]  ;;  %v31_v42 = vld [vmem:[%s1711_s0 + $0x50] sm:$0xff]  ;;  %v65_v48 = vld [vmem:[%s1711_s0 + $0x160] sm:$0xff]  ;;  %vm232_vm2 = vcmask 195712   ;;  %vm239_vm3 = vcmask 261312  }
  0x19   :  { %417 = vmax.xlane.f32.xlu0 %v416_v23  ;;  %v32_v43 = vld [vmem:[%s1711_s0 + $0x58] sm:$0xff]  ;;  %v149_v44 = vadd.f32 %v64_v41, %v63_v40  ;;  %v473_v46 = vmax.f32 %v63_v40, %v64_v41  ;;  %v66_v49 = vld [vmem:[%s1711_s0 + $0x168] sm:$0xff]  ;;  %v33_v50 = vld [vmem:[%s1711_s0 + $0x60] sm:$0xff]  ;;  %vm246_vm4 = vcmask 326912   ;;  %vm253_vm5 = vcmask 392512  }
  0x1a   :  { %v101_v45 = vadd.f32 %v32_v43, %v31_v42  ;;  %v425_v47 = vmax.f32 %v31_v42, %v32_v43  ;;  %v34_v51 = vld [vmem:[%s1711_s0 + $0x68] sm:$0xff]  ;;  %v152_v52 = vadd.f32 %v66_v49, %v65_v48  ;;  %v476_v54 = vmax.f32 %v65_v48, %v66_v49  ;;  %v67_v56 = vld [vmem:[%s1711_s0 + $0x170] sm:$0xff]  ;;  %v68_v57 = vld [vmem:[%s1711_s0 + $0x178] sm:$0xff] }
  0x1b   :  { %v104_v53 = vadd.f32 %v34_v51, %v33_v50  ;;  %v428_v55 = vmax.f32 %v33_v50, %v34_v51  ;;  %v35_v58 = vld [vmem:[%s1711_s0 + $0x70] sm:$0xff]  ;;  %v36_v59 = vld [vmem:[%s1711_s0 + $0x78] sm:$0xff]  ;;  %v155_v60 = vadd.f32 %v68_v57, %v67_v56  ;;  %v479_v62 = vmax.f32 %v67_v56, %v68_v57  ;;  %v69_v0 = vld [vmem:[%s1711_s0 + $0x180] sm:$0xff] }
  0x1c   :  { %144 = vadd.xlane.f32.xlu1 %v143_v28  ;;  %v107_v61 = vadd.f32 %v36_v59, %v35_v58  ;;  %v431_v63 = vmax.f32 %v35_v58, %v36_v59  ;;  %v70_v1 = vld [vmem:[%s1711_s0 + $0x188] sm:$0xff]  ;;  %v37_v2 = vld [vmem:[%s1711_s0 + $0x80] sm:$0xff]  ;;  %v71_v8 = vld [vmem:[%s1711_s0 + $0x190] sm:$0xff]  ;;  %vm260_vm6 = vcmask 458112   ;;  %vm267_vm7 = vcmask 523712  }
  0x1d   :  { %96 = vadd.xlane.f32.xlu0 %v95_v29  ;;  %v38_v3 = vld [vmem:[%s1711_s0 + $0x88] sm:$0xff]  ;;  %v158_v4 = vadd.f32 %v70_v1, %v69_v0  ;;  %v482_v6 = vmax.f32 %v69_v0, %v70_v1  ;;  %v72_v9 = vld [vmem:[%s1711_s0 + $0x198] sm:$0xff]  ;;  %v39_v10 = vld [vmem:[%s1711_s0 + $0x90] sm:$0xff]  ;;  %vm274_vm8 = vcmask 589312   ;;  %vm281_vm9 = vcmask 654912  }
  0x1e   :  { %v110_v5 = vadd.f32 %v38_v3, %v37_v2  ;;  %v434_v7 = vmax.f32 %v37_v2, %v38_v3  ;;  %v40_v11 = vld [vmem:[%s1711_s0 + $0x98] sm:$0xff]  ;;  %v161_v12 = vadd.f32 %v72_v9, %v71_v8  ;;  %v485_v14 = vmax.f32 %v71_v8, %v72_v9  ;;  %v73_v16 = vld [vmem:[%s1711_s0 + $0x1a0] sm:$0xff]  ;;  %v74_v17 = vld [vmem:[%s1711_s0 + $0x1a8] sm:$0xff] }
  0x1f   :  { %v113_v13 = vadd.f32 %v40_v11, %v39_v10  ;;  %v437_v15 = vmax.f32 %v39_v10, %v40_v11  ;;  %v41_v18 = vld [vmem:[%s1711_s0 + $0xa0] sm:$0xff]  ;;  %v42_v19 = vld [vmem:[%s1711_s0 + $0xa8] sm:$0xff]  ;;  %v164_v20 = vadd.f32 %v74_v17, %v73_v16  ;;  %v488_v22 = vmax.f32 %v73_v16, %v74_v17  ;;  %v75_v24 = vld [vmem:[%s1711_s0 + $0x1b0] sm:$0xff] }
  0x20   :  { %468 = vmax.xlane.f32.xlu1 %v467_v30  ;;  %v116_v21 = vadd.f32 %v42_v19, %v41_v18  ;;  %v440_v23 = vmax.f32 %v41_v18, %v42_v19  ;;  %v76_v25 = vld [vmem:[%s1711_s0 + $0x1b8] sm:$0xff]  ;;  %v43_v26 = vld [vmem:[%s1711_s0 + $0xb0] sm:$0xff]  ;;  %v77_v32 = vld [vmem:[%s1711_s0 + $0x1c0] sm:$0xff]  ;;  %v1128_v3 = vmov 0.0|0.0   ;;  %v1129_v10 = vmov 0.0  }
  0x21   :  { %420 = vmax.xlane.f32.xlu0 %v419_v31  ;;  %v44_v27 = vld [vmem:[%s1711_s0 + $0xb8] sm:$0xff]  ;;  %v167_v28 = vadd.f32 %v76_v25, %v75_v24  ;;  %v491_v30 = vmax.f32 %v75_v24, %v76_v25  ;;  %v78_v33 = vld [vmem:[%s1711_s0 + $0x1c8] sm:$0xff]  ;;  %v45_v34 = vld [vmem:[%s1711_s0 + $0xc0] sm:$0xff]  ;;  %1044 = vmatprep.subr.bf16.mxu0 %v1128_v3  ;;  %19 = vst [vmem:[#allocation2] sm:$0x3] %v1129_v10  ;;  %v214_v11 = vlaneseq  ;;  %vm288_vm10 = vcmask 720512  }
  0x22   :  { %v119_v29 = vadd.f32 %v44_v27, %v43_v26  ;;  %v443_v31 = vmax.f32 %v43_v26, %v44_v27  ;;  %v46_v35 = vld [vmem:[%s1711_s0 + $0xc8] sm:$0xff]  ;;  %v79_v40 = vld [vmem:[%s1711_s0 + $0x1d0] sm:$0xff]  ;;  %v80_v41 = vld [vmem:[%s1711_s0 + $0x1d8] sm:$0xff]  ;;  %1068 = vmatprep.subr.bf16.mxu1 %v1128_v3  ;;  %1006 = vmatprep.mubr.msk.f32.mxu0 %vm1131_vm1, %v1129_v10  ;;  %vm295_vm11 = vcmask 786112   ;;  %vm302_vm12 = vcmask 851712  }
  0x23   :  { %v47_v42 = vld [vmem:[%s1711_s0 + $0xd0] sm:$0xff]  ;;  %v48_v43 = vld [vmem:[%s1711_s0 + $0xd8] sm:$0xff]  ;;  %v81_v48 = vld [vmem:[%s1711_s0 + $0x1e0] sm:$0xff]  ;;  %v1377_v16 = vand.u32 127, %v214_v11  ;;  %v1379_v17 = vshrl.u32 %v214_v11, 7  ;;  %1041 = vmatprep.mubr.msk.f32.mxu1 %vm1131_vm1, %v1129_v10  ;;  %vm309_vm13 = vcmask 917312  }
  0x24   :  { %147 = vadd.xlane.f32.xlu1 %v146_v36  ;;  %v170_v36 = vadd.f32 %v78_v33, %v77_v32  ;;  %v82_v49 = vld [vmem:[%s1711_s0 + $0x1e8] sm:$0xff]  ;;  %v49_v50 = vld [vmem:[%s1711_s0 + $0xe0] sm:$0xff]  ;;  %v83_v56 = vld [vmem:[%s1711_s0 + $0x1f0] sm:$0xff]  ;;  %vm316_vm14 = vcmask 982912   ;;  %vm323_vm15 = vcmask 1048512   ;;  %vm709_vm1 = vcmask 1041408  }
  0x25   :  { %99 = vadd.xlane.f32.xlu0 %v98_v37  ;;  %v122_v37 = vadd.f32 %v46_v35, %v45_v34  ;;  %v50_v51 = vld [vmem:[%s1711_s0 + $0xe8] sm:$0xff]  ;;  %v84_v57 = vld [vmem:[%s1711_s0 + $0x1f8] sm:$0xff]  ;;  %v51_v58 = vld [vmem:[%s1711_s0 + $0xf0] sm:$0xff]  ;;  %v220_v18 = vadd.s32 4294967288, %v1377_v16 }
  0x26   :  { %v52_v59 = vld [vmem:[%s1711_s0 + $0xf8] sm:$0xff]  ;;  %v711_v0 = vld [vmem:[%s1712_s1] sm:$0xff]  ;;  %v712_v1 = vld [vmem:[%s1712_s1 + $0x8] sm:$0xff] }
  0x27   :  { %v1045_v2 = vpack.c.bf16 %v712_v1, %v711_v0  ;;  %v716_v8 = vld [vmem:[%s1712_s1 + $0x28] sm:$0xff]  ;;  %v719_v19 = vld [vmem:[%s1712_s1 + $0x40] sm:$0xff]  ;;  %v223_v25 = vsub.s32 %v220_v18, %v1379_v17  ;;  %v721_v26 = vld [vmem:[%s1712_s1 + $0x50] sm:$0xff] }
  0x28   :  { %471 = vmax.xlane.f32.xlu1 %v470_v38  ;;  %v494_v38 = vmax.f32 %v77_v32, %v78_v33  ;;  %v722_v27 = vld [vmem:[%s1712_s1 + $0x58] sm:$0xff] }
  0x29   :  { %423 = vmax.xlane.f32.xlu0 %v422_v39  ;;  %v446_v39 = vmax.f32 %v45_v34, %v46_v35  ;;  %1046 = vmatpush3.bf16.msra.mxu0 %v1045_v2 }
  0x2a   :  { %1047 = vmatprep.subr.bf16.mxu0 %v1128_v3 }
  0x2c   :  { %150 = vadd.xlane.f32.xlu1 %v149_v44  ;;  %v173_v44 = vadd.f32 %v80_v41, %v79_v40 }
  0x2d   :  { %102 = vadd.xlane.f32.xlu0 %v101_v45  ;;  %v125_v45 = vadd.f32 %v48_v43, %v47_v42 }
  0x30   :  { %474 = vmax.xlane.f32.xlu1 %v473_v46  ;;  %v497_v46 = vmax.f32 %v79_v40, %v80_v41 }
  0x31   :  { %426 = vmax.xlane.f32.xlu0 %v425_v47  ;;  %v449_v47 = vmax.f32 %v47_v42, %v48_v43 }
  0x34   :  { %153 = vadd.xlane.f32.xlu1 %v152_v52  ;;  %v176_v52 = vadd.f32 %v82_v49, %v81_v48 }
  0x35   :  { %105 = vadd.xlane.f32.xlu0 %v104_v53  ;;  %v128_v53 = vadd.f32 %v50_v51, %v49_v50 }
  0x38   :  { %477 = vmax.xlane.f32.xlu1 %v476_v54  ;;  %v500_v54 = vmax.f32 %v81_v48, %v82_v49 }
  0x39   :  { %429 = vmax.xlane.f32.xlu0 %v428_v55  ;;  %v452_v55 = vmax.f32 %v49_v50, %v50_v51 }
  0x3c   :  { %156 = vadd.xlane.f32.xlu1 %v155_v60  ;;  %v179_v60 = vadd.f32 %v84_v57, %v83_v56 }
  0x3d   :  { %108 = vadd.xlane.f32.xlu0 %v107_v61  ;;  %v131_v61 = vadd.f32 %v52_v59, %v51_v58 }
  0x40   :  { %480 = vmax.xlane.f32.xlu1 %v479_v62  ;;  %v503_v62 = vmax.f32 %v83_v56, %v84_v57  ;;  %v800_v56 = vld [vmem:[%s1713_s2 + $0x10] sm:$0xff] }
  0x41   :  { %432 = vmax.xlane.f32.xlu0 %v431_v63  ;;  %v455_v63 = vmax.f32 %v51_v58, %v52_v59 }
  0x44   :  { %159 = vadd.xlane.f32.xlu1 %v158_v4  ;;  %v713_v4 = vld [vmem:[%s1712_s1 + $0x10] sm:$0xff] }
  0x45   :  { %111 = vadd.xlane.f32.xlu0 %v110_v5  ;;  %v714_v5 = vld [vmem:[%s1712_s1 + $0x18] sm:$0xff] }
  0x48   :  { %483 = vmax.xlane.f32.xlu1 %v482_v6  ;;  %v1048_v6 = vpack.c.bf16 %v714_v5, %v713_v4  ;;  %v802_v4 = vld [vmem:[%s1713_s2 + $0x20] sm:$0xff]  ;;  %v803_v5 = vld [vmem:[%s1713_s2 + $0x28] sm:$0xff] }
  0x49   :  { %435 = vmax.xlane.f32.xlu0 %v434_v7  ;;  %v715_v7 = vld [vmem:[%s1712_s1 + $0x20] sm:$0xff] }
  0x4a   :  { %1049 = vmatpush3.bf16.msra.mxu0 %v1048_v6  ;;  %v1051_v9 = vpack.c.bf16 %v716_v8, %v715_v7 }
  0x4b   :  { %1050 = vmatprep.subr.bf16.mxu0 %v1128_v3 }
  0x4c   :  { %162 = vadd.xlane.f32.xlu1 %v161_v12  ;;  %v717_v12 = vld [vmem:[%s1712_s1 + $0x30] sm:$0xff] }
  0x4d   :  { %114 = vadd.xlane.f32.xlu0 %v113_v13  ;;  %v718_v13 = vld [vmem:[%s1712_s1 + $0x38] sm:$0xff] }
  0x4e   :  { %1052 = vmatpush3.bf16.msra.mxu0 %v1051_v9 }
  0x4f   :  { %1053 = vmatprep.subr.bf16.mxu0 %v1128_v3 }
  0x50   :  { %486 = vmax.xlane.f32.xlu1 %v485_v14  ;;  %v1054_v14 = vpack.c.bf16 %v718_v13, %v717_v12  ;;  %v1075_v12 = vpack.c.bf16 %v803_v5, %v802_v4 }
  0x51   :  { %438 = vmax.xlane.f32.xlu0 %v437_v15  ;;  %v1130_v15 = vmov -inf  }
  0x52   :  { %20 = vst [vmem:[#allocation3] sm:$0x3] %v1130_v15  ;;  %1055 = vmatpush3.bf16.msra.mxu0 %v1054_v14  ;;  %v804_v14 = vld [vmem:[%s1713_s2 + $0x30] sm:$0xff]  ;;  %v805_v15 = vld [vmem:[%s1713_s2 + $0x38] sm:$0xff] }
  0x53   :  { %1056 = vmatprep.subr.bf16.mxu0 %v1128_v3 }
  0x54   :  { %165 = vadd.xlane.f32.xlu1 %v164_v20  ;;  %v720_v20 = vld [vmem:[%s1712_s1 + $0x48] sm:$0xff] }
  0x55   :  { %117 = vadd.xlane.f32.xlu0 %v116_v21  ;;  %v1057_v21 = vpack.c.bf16 %v720_v20, %v719_v19 }
  0x57   :  { %1058 = vmatpush3.bf16.msra.mxu0 %v1057_v21 }
  0x58   :  { %489 = vmax.xlane.f32.xlu1 %v488_v22  ;;  %1059 = vmatprep.subr.bf16.mxu0 %v1128_v3 }
  0x59   :  { %441 = vmax.xlane.f32.xlu0 %v440_v23  ;;  %v218_v23 = vsub.s32 %v1377_v16, %v1379_v17 }
  0x5c   :  { %168 = vadd.xlane.f32.xlu1 %v167_v28  ;;  %v1060_v28 = vpack.c.bf16 %v722_v27, %v721_v26  ;;  %v806_v26 = vld [vmem:[%s1713_s2 + $0x40] sm:$0xff]  ;;  %v807_v27 = vld [vmem:[%s1713_s2 + $0x48] sm:$0xff] }
  0x5d   :  { %120 = vadd.xlane.f32.xlu0 %v119_v29 }
  0x5e   :  { %1061 = vmatpush3.bf16.msra.mxu0 %v1060_v28 }
  0x5f   :  { %1062 = vmatprep.subr.bf16.mxu0 %v1128_v3 }
  0x60   :  { %492 = vmax.xlane.f32.xlu1 %v491_v30  ;;  %v723_v30 = vld [vmem:[%s1712_s1 + $0x60] sm:$0xff] }
  0x61   :  { %444 = vmax.xlane.f32.xlu0 %v443_v31  ;;  %v724_v31 = vld [vmem:[%s1712_s1 + $0x68] sm:$0xff] }
  0x62   :  { %v1063_v35 = vpack.c.bf16 %v724_v31, %v723_v30 }
  0x64   :  { %171 = vadd.xlane.f32.xlu1 %v170_v36  ;;  %v725_v36 = vld [vmem:[%s1712_s1 + $0x70] sm:$0xff]  ;;  %1064 = vmatpush3.bf16.msra.mxu0 %v1063_v35 }
  0x65   :  { %123 = vadd.xlane.f32.xlu0 %v122_v37  ;;  %v726_v37 = vld [vmem:[%s1712_s1 + $0x78] sm:$0xff]  ;;  %1065 = vmatprep.subr.bf16.mxu0 %v1128_v3 }
  0x66   :  { %v1066_v43 = vpack.c.bf16 %v726_v37, %v725_v36  ;;  %v808_v36 = vld [vmem:[%s1713_s2 + $0x50] sm:$0xff]  ;;  %v809_v37 = vld [vmem:[%s1713_s2 + $0x58] sm:$0xff] }
  0x68   :  { %495 = vmax.xlane.f32.xlu1 %v494_v38  ;;  %1067 = vmatpush3.bf16.msra.mxu0 %v1066_v43 }
  0x69   :  { %447 = vmax.xlane.f32.xlu0 %v446_v39 }
  0x6c   :  { %174 = vadd.xlane.f32.xlu1 %v173_v44 }
  0x6d   :  { %126 = vadd.xlane.f32.xlu0 %v125_v45 }
  0x70   :  { %498 = vmax.xlane.f32.xlu1 %v497_v46  ;;  %v227_v46 = vadd.s32 4294967280, %v1377_v16 }
  0x71   :  { %450 = vmax.xlane.f32.xlu0 %v449_v47 }
  0x74   :  { %177 = vadd.xlane.f32.xlu1 %v176_v52  ;;  %v230_v52 = vsub.s32 %v227_v46, %v1379_v17  ;;  %v810_v46 = vld [vmem:[%s1713_s2 + $0x60] sm:$0xff] }
  0x75   :  { %129 = vadd.xlane.f32.xlu0 %v128_v53 }
  0x78   :  { %501 = vmax.xlane.f32.xlu1 %v500_v54  ;;  %v798_v54 = vld [vmem:[%s1713_s2] sm:$0xff] }
  0x79   :  { %453 = vmax.xlane.f32.xlu0 %v452_v55  ;;  %v799_v55 = vld [vmem:[%s1713_s2 + $0x8] sm:$0xff] }
  0x7a   :  { %v1069_v59 = vpack.c.bf16 %v799_v55, %v798_v54 }
  0x7c   :  { %180 = vadd.xlane.f32.xlu1 %v179_v60  ;;  %v801_v60 = vld [vmem:[%s1713_s2 + $0x18] sm:$0xff]  ;;  %1070 = vmatpush3.bf16.msra.mxu1 %v1069_v59 }
  0x7d   :  { %132 = vadd.xlane.f32.xlu0 %v131_v61  ;;  %v1072_v1 = vpack.c.bf16 %v801_v60, %v800_v56  ;;  %1071 = vmatprep.subr.bf16.mxu1 %v1128_v3 }
  0x80   :  { %504 = vmax.xlane.f32.xlu1 %v503_v62  ;;  %1073 = vmatpush3.bf16.msra.mxu1 %v1072_v1 }
  0x81   :  { %456 = vmax.xlane.f32.xlu0 %v455_v63  ;;  %v234_v63 = vadd.s32 4294967272, %v1377_v16  ;;  %1074 = vmatprep.subr.bf16.mxu1 %v1128_v3 }
  0x83   :  { %v237_v10 = vsub.s32 %v234_v63, %v1379_v17 }
  0x84   :  { %1076 = vmatpush3.bf16.msra.mxu1 %v1075_v12 }
  0x85   :  { %1077 = vmatprep.subr.bf16.mxu1 %v1128_v3 }
  0x91   :  { %v136_v22 = vpop.xlane.xlu1 %135 }
  0x92   :  { %v88_v24 = vpop.xlane.xlu0 %87  ;;  %v328_v32 = vrot.slane %v136_v22, %v218_v23  ;;  %v241_v22 = vadd.s32 4294967264, %v1377_v16 }
  0x93   :  { %v219_v38 = vrot.slane %v88_v24, %v218_v23  ;;  %v1078_v24 = vpack.c.bf16 %v805_v15, %v804_v14 }
  0x95   :  { %v139_v29 = vpop.xlane.xlu1 %138  ;;  %1079 = vmatpush3.bf16.msra.mxu1 %v1078_v24 }
  0x96   :  { %v332_v33 = vrot.slane %v139_v29, %v223_v25  ;;  %v91_v34 = vpop.xlane.xlu0 %90  ;;  %1080 = vmatprep.subr.bf16.mxu1 %v1128_v3 }
  0x97   :  { %v224_v39 = vrot.slane %v91_v34, %v223_v25  ;;  %v1081_v34 = vpack.c.bf16 %v807_v27, %v806_v26 }
  0x98   :  { %v333_v40 = vsel %vm225_vm0, %v332_v33, %v328_v32  ;;  %v244_v32 = vsub.s32 %v241_v22, %v1379_v17 }
  0x99   :  { %v226_v41 = vsel %vm225_vm0, %v224_v39, %v219_v38  ;;  %v415_v42 = vpop.xlane.xlu1 %414  ;;  %1082 = vmatpush3.bf16.msra.mxu1 %v1081_v34  ;;  %v262_v34 = vadd.s32 4294967240, %v1377_v16 }
  0x9a   :  { %v545_v44 = vrot.slane %v415_v42, %v223_v25  ;;  %v412_v45 = vpop.xlane.xlu0 %411  ;;  %v248_v42 = vadd.s32 4294967256, %v1377_v16  ;;  %1083 = vmatprep.subr.bf16.mxu1 %v1128_v3 }
  0x9b   :  { %v541_v47 = vrot.slane %v412_v45, %v218_v23 }
  0x9d   :  { %v546_v48 = vsel %vm225_vm0, %v545_v44, %v541_v47  ;;  %v463_v49 = vpop.xlane.xlu1 %462  ;;  %v1084_v44 = vpack.c.bf16 %v809_v37, %v808_v36  ;;  %v811_v47 = vld [vmem:[%s1713_s2 + $0x68] sm:$0xff]  ;;  %v276_v36 = vadd.s32 4294967224, %v1377_v16 }
  0x9e   :  { %v624_v50 = vrot.slane %v463_v49, %v223_v25  ;;  %v460_v51 = vpop.xlane.xlu0 %459  ;;  %v1087_v54 = vpack.c.bf16 %v811_v47, %v810_v46 }
  0x9f   :  { %v620_v53 = vrot.slane %v460_v51, %v218_v23  ;;  %1085 = vmatpush3.bf16.msra.mxu1 %v1084_v44  ;;  %v297_v44 = vadd.s32 4294967200, %v1377_v16  ;;  %v279_v46 = vsub.s32 %v276_v36, %v1379_v17 }
  0xa0   :  { %1086 = vmatprep.subr.bf16.mxu1 %v1128_v3 }
  0xa1   :  { %v625_v57 = vsel %vm225_vm0, %v624_v50, %v620_v53  ;;  %v142_v58 = vpop.xlane.xlu1 %141  ;;  %vm404_vm0 = vcmask 1041409  }
  0xa2   :  { %v337_v61 = vrot.slane %v142_v58, %v230_v52  ;;  %v94_v62 = vpop.xlane.xlu0 %93 }
  0xa3   :  { %v231_v0 = vrot.slane %v94_v62, %v230_v52  ;;  %1088 = vmatpush3.bf16.msra.mxu1 %v1087_v54 }
  0xa4   :  { %v338_v2 = vsel %vm232_vm2, %v337_v61, %v333_v40  ;;  %1089 = vmatprep.subr.bf16.mxu1 %v1128_v3 }
  0xa5   :  { %v233_v6 = vsel %vm232_vm2, %v231_v0, %v226_v41  ;;  %v466_v7 = vpop.xlane.xlu1 %465 }
  0xa6   :  { %v629_v8 = vrot.slane %v466_v7, %v230_v52  ;;  %v418_v9 = vpop.xlane.xlu0 %417 }
  0xa7   :  { %v550_v11 = vrot.slane %v418_v9, %v230_v52  ;;  %v251_v52 = vsub.s32 %v248_v42, %v1379_v17  ;;  %v290_v42 = vadd.s32 4294967208, %v1377_v16 }
  0xa8   :  { %v630_v13 = vsel %vm232_vm2, %v629_v8, %v625_v57 }
  0xa9   :  { %v551_v18 = vsel %vm232_vm2, %v550_v11, %v546_v48  ;;  %v145_v19 = vpop.xlane.xlu1 %144 }
  0xaa   :  { %v342_v20 = vrot.slane %v145_v19, %v237_v10  ;;  %v97_v21 = vpop.xlane.xlu0 %96 }
  0xab   :  { %v238_v23 = vrot.slane %v97_v21, %v237_v10 }
  0xac   :  { %v343_v25 = vsel %vm239_vm3, %v342_v20, %v338_v2 }
  0xad   :  { %v240_v28 = vsel %vm239_vm3, %v238_v23, %v233_v6  ;;  %v469_v29 = vpop.xlane.xlu1 %468 }
  0xae   :  { %v634_v30 = vrot.slane %v469_v29, %v237_v10  ;;  %v421_v31 = vpop.xlane.xlu0 %420 }
  0xaf   :  { %v555_v33 = vrot.slane %v421_v31, %v237_v10 }
  0xb0   :  { %v635_v35 = vsel %vm239_vm3, %v634_v30, %v630_v13 }
  0xb1   :  { %v556_v38 = vsel %vm239_vm3, %v555_v33, %v551_v18  ;;  %v148_v39 = vpop.xlane.xlu1 %147 }
  0xb2   :  { %v347_v40 = vrot.slane %v148_v39, %v244_v32  ;;  %v100_v41 = vpop.xlane.xlu0 %99  ;;  %v283_v39 = vadd.s32 4294967216, %v1377_v16 }
  0xb3   :  { %v245_v43 = vrot.slane %v100_v41, %v244_v32  ;;  %v265_v41 = vsub.s32 %v262_v34, %v1379_v17 }
  0xb4   :  { %v348_v45 = vsel %vm246_vm4, %v347_v40, %v343_v25 }
  0xb5   :  { %v247_v48 = vsel %vm246_vm4, %v245_v43, %v240_v28  ;;  %v472_v49 = vpop.xlane.xlu1 %471 }
  0xb6   :  { %v639_v50 = vrot.slane %v472_v49, %v244_v32  ;;  %v424_v51 = vpop.xlane.xlu0 %423  ;;  %v318_v49 = vadd.s32 4294967176, %v1377_v16 }
  0xb7   :  { %v560_v53 = vrot.slane %v424_v51, %v244_v32  ;;  %v255_v32 = vadd.s32 4294967248, %v1377_v16 }
  0xb8   :  { %v640_v55 = vsel %vm246_vm4, %v639_v50, %v635_v35  ;;  %v269_v35 = vadd.s32 4294967232, %v1377_v16 }
  0xb9   :  { %v561_v56 = vsel %vm246_vm4, %v560_v53, %v556_v38  ;;  %v151_v57 = vpop.xlane.xlu1 %150  ;;  %v258_v38 = vsub.s32 %v255_v32, %v1379_v17 }
  0xba   :  { %v352_v58 = vrot.slane %v151_v57, %v251_v52  ;;  %v103_v59 = vpop.xlane.xlu0 %102  ;;  %v272_v43 = vsub.s32 %v269_v35, %v1379_v17  ;;  %v1577_v57 = vsub.s32 %v290_v42, %v1379_v17 }
  0xbb   :  { %v252_v60 = vrot.slane %v103_v59, %v251_v52 }
  0xbc   :  { %v1485_v61 = vsel %vm253_vm5, %v352_v58, %v348_v45  ;;  %v304_v45 = vadd.s32 4294967192, %v1377_v16  ;;  %v1581_v58 = vsub.s32 %v297_v44, %v1379_v17 }
  0xbd   :  { %v1488_v62 = vsel %vm253_vm5, %v252_v60, %v247_v48  ;;  %v475_v63 = vpop.xlane.xlu1 %474  ;;  %v311_v48 = vadd.s32 4294967184, %v1377_v16 }
  0xbe   :  { %v644_v0 = vrot.slane %v475_v63, %v251_v52  ;;  %v427_v1 = vpop.xlane.xlu0 %426  ;;  %v1584_v59 = vsub.s32 %v304_v45, %v1379_v17 }
  0xbf   :  { %v565_v2 = vrot.slane %v427_v1, %v251_v52  ;;  %v1569_v52 = vsub.s32 %v283_v39, %v1379_v17  ;;  %v1591_v1 = vsub.s32 %v311_v48, %v1379_v17 }
  0xc0   :  { %v1490_v4 = vsel %vm253_vm5, %v644_v0, %v640_v55 }
  0xc1   :  { %v1492_v5 = vsel %vm253_vm5, %v565_v2, %v561_v56  ;;  %v1494_v6 = vpop.xlane.xlu1 %153  ;;  %v1594_v2 = vsub.s32 %v318_v49, %v1379_v17 }
  0xc2   :  { %v1496_v7 = vpop.xlane.xlu0 %105  ;;  %v357_v50 = vrot.slane %v1494_v6, %v258_v38 }
  0xc3   :  { %v259_v51 = vrot.slane %v1496_v7, %v258_v38 }
  0xc4   :  { %v358_v6 = vsel %vm260_vm6, %v357_v50, %v1485_v61 }
  0xc5   :  { %v1498_v8 = vpop.xlane.xlu1 %477  ;;  %v261_v7 = vsel %vm260_vm6, %v259_v51, %v1488_v62 }
  0xc6   :  { %v1500_v9 = vpop.xlane.xlu0 %429  ;;  %v649_v54 = vrot.slane %v1498_v8, %v258_v38 }
  0xc7   :  { %v570_v55 = vrot.slane %v1500_v9, %v258_v38 }
  0xc9   :  { %v1502_v10 = vpop.xlane.xlu1 %156 }
  0xca   :  { %v1504_v3 = vpop.xlane.xlu0 %108  ;;  %v362_v56 = vrot.slane %v1502_v10, %v265_v41 }
  0xcb   :  { %v266_v16 = vrot.slane %v1504_v3, %v265_v41  ;;  %v650_v3 = vsel %vm260_vm6, %v649_v54, %v1490_v4 }
  0xcd   :  { %v1506_v11 = vpop.xlane.xlu1 %480  ;;  %v268_v62 = vsel %vm267_vm7, %v266_v16, %v261_v7 }
  0xce   :  { %v1508_v12 = vpop.xlane.xlu0 %432  ;;  %v654_v60 = vrot.slane %v1506_v11, %v265_v41  ;;  %v571_v11 = vsel %vm260_vm6, %v570_v55, %v1492_v5 }
  0xcf   :  { %v575_v63 = vrot.slane %v1508_v12, %v265_v41  ;;  %v363_v12 = vsel %vm267_vm7, %v362_v56, %v358_v6 }
  0xd0   :  { %v655_v34 = vsel %vm267_vm7, %v654_v60, %v650_v3 }
  0xd1   :  { %v1510_v13 = vpop.xlane.xlu1 %159  ;;  %v576_v4 = vsel %vm267_vm7, %v575_v63, %v571_v11 }
  0xd2   :  { %v1512_v14 = vpop.xlane.xlu0 %111  ;;  %v367_v8 = vrot.slane %v1510_v13, %v272_v43 }
  0xd3   :  { %v273_v9 = vrot.slane %v1512_v14, %v272_v43 }
  0xd5   :  { %v1514_v15 = vpop.xlane.xlu1 %483  ;;  %v275_v38 = vsel %vm274_vm8, %v273_v9, %v268_v62 }
  0xd6   :  { %v1516_v18 = vpop.xlane.xlu0 %435  ;;  %v659_v61 = vrot.slane %v1514_v15, %v272_v43  ;;  %v368_v15 = vsel %vm274_vm8, %v367_v8, %v363_v12 }
  0xd7   :  { %v580_v13 = vrot.slane %v1516_v18, %v272_v43 }
  0xd8   :  { %v660_v39 = vsel %vm274_vm8, %v659_v61, %v655_v34  ;;  %v85_v61 = vld [vmem:[#allocation2] sm:$0x3] }
  0xd9   :  { %v1518_v19 = vpop.xlane.xlu1 %162  ;;  %v581_v42 = vsel %vm274_vm8, %v580_v13, %v576_v4 }
  0xda   :  { %v1520_v20 = vpop.xlane.xlu0 %114  ;;  %v372_v14 = vrot.slane %v1518_v19, %v279_v46 }
  0xdb   :  { %v280_v32 = vrot.slane %v1520_v20, %v279_v46 }
  0xdd   :  { %v1522_v21 = vpop.xlane.xlu1 %486  ;;  %v282_v43 = vsel %vm281_vm9, %v280_v32, %v275_v38 }
  0xde   :  { %v1524_v22 = vpop.xlane.xlu0 %438  ;;  %v664_v5 = vrot.slane %v1522_v21, %v279_v46 }
  0xdf   :  { %v585_v35 = vrot.slane %v1524_v22, %v279_v46 }
  0xe0   :  { %v665_v44 = vsel %vm281_vm9, %v664_v5, %v660_v39 }
  0xe1   :  { %v1526_v23 = vpop.xlane.xlu1 %165 }
  0xe2   :  { %v1528_v24 = vpop.xlane.xlu0 %117  ;;  %v377_v18 = vrot.slane %v1526_v23, %v1569_v52  ;;  %v373_v23 = vsel %vm281_vm9, %v372_v14, %v368_v15 }
  0xe3   :  { %v287_v19 = vrot.slane %v1528_v24, %v1569_v52 }
  0xe4   :  { %v378_v46 = vsel %vm288_vm10, %v377_v18, %v373_v23 }
  0xe5   :  { %v1530_v25 = vpop.xlane.xlu1 %489  ;;  %v289_v48 = vsel %vm288_vm10, %v287_v19, %v282_v43  ;;  %v409_v19 = vld [vmem:[#allocation3] sm:$0x3] }
  0xe6   :  { %v1532_v26 = vpop.xlane.xlu0 %441  ;;  %v669_v21 = vrot.slane %v1530_v25, %v1569_v52  ;;  %v586_v25 = vsel %vm281_vm9, %v585_v35, %v581_v42 }
  0xe7   :  { %v590_v22 = vrot.slane %v1532_v26, %v1569_v52 }
  0xe8   :  { %v670_v51 = vsel %vm288_vm10, %v669_v21, %v665_v44 }
  0xe9   :  { %v1534_v27 = vpop.xlane.xlu1 %168  ;;  %v591_v52 = vsel %vm288_vm10, %v590_v22, %v586_v25 }
  0xea   :  { %v1536_v28 = vpop.xlane.xlu0 %120  ;;  %v382_v41 = vrot.slane %v1534_v27, %v1577_v57 }
  0xeb   :  { %v294_v24 = vrot.slane %v1536_v28, %v1577_v57 }
  0xed   :  { %v1538_v29 = vpop.xlane.xlu1 %492  ;;  %v296_v54 = vsel %vm295_vm11, %v294_v24, %v289_v48  ;;  %v813_v24 = vld [vmem:[%s1713_s2 + $0x78] sm:$0xff] }
  0xee   :  { %v1540_v30 = vpop.xlane.xlu0 %444  ;;  %v674_v55 = vrot.slane %v1538_v29, %v1577_v57 }
  0xf1   :  { %v1542_v31 = vpop.xlane.xlu1 %171 }
  0xf2   :  { %v1545_v33 = vpop.xlane.xlu0 %123  ;;  %v387_v26 = vrot.slane %v1542_v31, %v1581_v58  ;;  %v383_v31 = vsel %vm295_vm11, %v382_v41, %v378_v46 }
  0xf3   :  { %v301_v27 = vrot.slane %v1545_v33, %v1581_v58 }
  0xf5   :  { %v1550_v37 = vpop.xlane.xlu1 %495  ;;  %v303_v16 = vsel %vm302_vm12, %v301_v27, %v296_v54 }
  0xf6   :  { %v1554_v40 = vpop.xlane.xlu0 %447  ;;  %v679_v60 = vrot.slane %v1550_v37, %v1581_v58 }
  0xf7   :  { %v600_v63 = vrot.slane %v1554_v40, %v1581_v58  ;;  %v675_v58 = vsel %vm295_vm11, %v674_v55, %v670_v51 }
  0xf8   :  { %v680_v13 = vsel %vm302_vm12, %v679_v60, %v675_v58 }
  0xf9   :  { %v1562_v47 = vpop.xlane.xlu1 %174 }
  0xfa   :  { %v1571_v53 = vpop.xlane.xlu0 %126  ;;  %v392_v49 = vrot.slane %v1562_v47, %v1584_v59  ;;  %v595_v47 = vrot.slane %v1540_v30, %v1577_v57 }
  0xfb   :  { %v308_v28 = vrot.slane %v1571_v53, %v1584_v59  ;;  %v388_v53 = vsel %vm302_vm12, %v387_v26, %v383_v31 }
  0xfc   :  { %v393_v7 = vsel %vm309_vm13, %v392_v49, %v388_v53  ;;  %v596_v62 = vsel %vm295_vm11, %v595_v47, %v591_v52  ;;  %v1132_v52 = vmov 1966171168  }
  0xfd   :  { %v1588_v0 = vpop.xlane.xlu1 %498  ;;  %v310_v29 = vsel %vm309_vm13, %v308_v28, %v303_v16  ;;  %v601_v14 = vsel %vm302_vm12, %v600_v63, %v596_v62  ;;  %v896_v31 = vunpack.c.l.s4 %v1132_v52 }
  0xfe   :  { %v1602_v10 = vpop.xlane.xlu0 %450  ;;  %v684_v30 = vrot.slane %v1588_v0, %v1584_v59 }
  0xff   :  { %v605_v9 = vrot.slane %v1602_v10, %v1584_v59 }
 0x100   :  { %v685_v32 = vsel %vm309_vm13, %v684_v30, %v680_v13 }
 0x101   :  { %v178_v36 = vpop.xlane.xlu1 %177 }
 0x102   :  { %v130_v20 = vpop.xlane.xlu0 %129  ;;  %v397_v33 = vrot.slane %v178_v36, %v1591_v1 }
 0x103   :  { %v315_v56 = vrot.slane %v130_v20, %v1591_v1 }
 0x104   :  { %v398_v3 = vsel %vm316_vm14, %v397_v33, %v393_v7  ;;  %v897_v33 = vunpack.c.0.s8 %v896_v31 }
 0x105   :  { %v502_v45 = vpop.xlane.xlu1 %501  ;;  %v317_v11 = vsel %vm316_vm14, %v315_v56, %v310_v29 }
 0x106   :  { %v454_v50 = vpop.xlane.xlu0 %453  ;;  %v689_v37 = vrot.slane %v502_v45, %v1591_v1  ;;  %v900_v54 = vsub.s32 %v897_v33, %v1379_v17 }
 0x107   :  { %v610_v12 = vrot.slane %v454_v50, %v1591_v1  ;;  %v606_v1 = vsel %vm309_vm13, %v605_v9, %v601_v14 }
 0x108   :  { %v690_v35 = vsel %vm316_vm14, %v689_v37, %v685_v32 }
 0x109   :  { %v181_v6 = vpop.xlane.xlu1 %180  ;;  %v611_v38 = vsel %vm316_vm14, %v610_v12, %v606_v1 }
 0x10a   :  { %v402_v57 = vrot.slane %v181_v6, %v1594_v2  ;;  %v133_v8 = vpop.xlane.xlu0 %132 }
 0x10b   :  { %v322_v40 = vrot.slane %v133_v8, %v1594_v2 }
 0x10c   :  { %v403_v0 = vsel %vm323_vm15, %v402_v57, %v398_v3 }
 0x10d   :  { %v324_v59 = vsel %vm323_vm15, %v322_v40, %v317_v11  ;;  %v505_v10 = vpop.xlane.xlu1 %504 }
 0x10e   :  { %v405_v34 = vsel %vm404_vm0, %v403_v0, %v324_v59  ;;  %v694_v4 = vrot.slane %v505_v10, %v1594_v2  ;;  %v457_v5 = vpop.xlane.xlu0 %456 }
 0x10f   :  { %v615_v36 = vrot.slane %v457_v5, %v1594_v2  ;;  %v407_v15 = vadd.f32 %v405_v34, %v85_v61  ;;  %v812_v2 = vld [vmem:[%s1713_s2 + $0x70] sm:$0xff]  ;;  %s1133_s2 = smov [#allocation4]  }
 0x110   :  { %v695_v18 = vsel %vm323_vm15, %v694_v4, %v690_v35  ;;  %v1090_v44 = vpack.c.bf16 %v813_v24, %v812_v2  ;;  %s926_s10 = sshll.u32 %s1133_s2, 4  ;;  %s927_s10 = int_to_ptr.vmem [resolvable:$true] %s926_s10 }
 0x111   :  { %v616_v20 = vsel %vm323_vm15, %v615_v36, %v611_v38  ;;  %408 = vst [vmem:[#allocation2] sm:$0x3] %v407_v15  ;;  %s1104_s11 = scalar_lea.vmem %s927_s10, 32  ;;  %p1109_p1 = scmp.lt.s32.totalorder %s927_s10, %s927_s10 }
 0x112   :  { %v696_v39 = vsel %vm404_vm0, %v695_v18, %v616_v20  ;;  %1091 = vmatpush3.bf16.msra.mxu1 %v1090_v44  ;;  %p1105_p0 = scmp.ne.s32.totalorder %s927_s10, %s1104_s11  ;;  %p1110_p2 = scmp.lt.s32.totalorder %s1104_s11, %s1104_s11 }
 0x113   :  { %v698_v21 = vmax.f32 %v409_v19, %v696_v39 }
 0x114   :  { %p1111_p3 = por %p1110_p2, %p1109_p1 }
 0x115   :  { %699 = vst [vmem:[#allocation3] sm:$0x3] %v698_v21 }
 0x116   :  { %p1112_p4 = pnand %p1111_p3, %p1105_p0 }
 0x118   :  { %v703_v22 = vld [vmem:[#allocation2] sm:$0x3] }
 0x119   :  { %v704_v42 = vmul.f32 0.00390625, %v703_v22 }
 0x11c   :  { %v705_v41 = vld [vmem:[#allocation3] sm:$0x3] }
 0x11d   :  { %v707_v23 = vrot.slane %v705_v41, 6 }
 0x11f   :  { %v710_v43 = vsel %vm709_vm1, %v704_v42, %v707_v23 }
 0x120   :  { %1007 = vmatmul.mubr.f32.vlgmr.msra.gmra.mrb[0].mxu0 %v710_v43 }
 0x1f3   :  { %v793_v25 = vpop.f32.mrb[0].mxu0 }
 0x1f4   :  { %v797_v26 = vmax.f32 %v793_v25, 0.0  ;;  %v1008_v27 = vpop.f32.mrb[1].mxu0 }
 0x1f6   :  { %1042 = vmatmul.mubr.f32.vlgmr.msra.gmra.mrb[0].mxu1 %v797_v26 }
 0x2c9   :  { %v880_v45 = vpop.f32.mrb[0].mxu1 }
 0x2ca   :  { %v885_v46 = vrot.slane %v880_v45, 2  ;;  %v1043_v48 = vpop.f32.mrb[1].mxu1 }
 0x2cc   :  { %v887_v49 = vadd.f32 %v885_v46, %v880_v45 }
 0x2ce   :  { %v937_v28 = vmul.f32 -1.442695, %v887_v49 }
 0x2d0   :  { %1100 = vpow2.f32 %v937_v28 }
 0x2da   :  { %v1101_v50 = vpop.eup %1100 }
 0x2db   :  { %v891_v51 = vadd.f32 1.0, %v1101_v50 }
 0x2dd   :  { %1102 = vrcp.f32 %v891_v51 }
 0x2e7   :  { %v1103_v55 = vpop.eup %1102 }
 0x2e8   :  { %v901_v47 = vrot.slane %v1103_v55, %v900_v54 }
 0x2ea   :  { %v902_v56 = vcombine.high %v901_v47, %v901_v47  ;;  %938 = vst.sshfl [vmem:[#allocation4] sm:$0x1 pattern:$0x73625140] %v901_v47 }
 0x2ec   :  { %939 = vst.sshfl [vmem:[#allocation4 + $0x1] sm:$0x1 pattern:$0x73625140] %v902_v56 }
 0x2ed   :  { %1115 = shalt.err (!%p1112_p4)
}
 0x2ee   :  { %s1116_s14 = scalar_lea.hbm %s1714_s3, 32 }
 0x2ef   :  { %p1117_p5 = scmp.ne.s32.totalorder %s1714_s3, %s1116_s14  ;;  %p1120_p6 = scmp.lt.u32.totalorder %s1116_s14, %s1714_s3 }
 0x2f1   :  { %p1122_p7 = pnand %p1120_p6, %p1117_p5 }
 0x2f3   :  { %1125 = shalt.err (!%p1122_p7)
}
 0x2f4   :  { %s1134_s19 = smov 16   ;;  %s1135_s20 = smov 1  }
 0x2f5   :  { %932 = dma.vmem_to_hbm [thread:$0]  %s927_s10, 32, %s1714_s3, [#allocation5], %s1134_s19, %s1134_s19, %s1135_s20  }
 0x2f6   :  { %1126 = dma.done.wait [#allocation5], 32  }
 0x2f7   :  { %1127 = vsyncadd [#allocation5], 4294967264 }
 0x2f8   :  { %936 = vsyncpa [#allocation5], 1 }

</bundles_post_ra>
